<compile_context>
chip_gen: v5e
topology: v5e:2x2
jax: 0.10.0
libtpu: 0.0.40
codegen_flags: <defaults>
</compile_context>

<pallas_src>
import numpy as np
import jax
import jax.numpy as jnp
from jax.experimental import pallas as pl
from jax.experimental.pallas import tpu as pltpu


def _round_up(n, m):
    return (n + m - 1) // m * m


def encoder_kernel(x_ref, w1_ref, b1_ref, w2_ref, b2_ref, mu_ref, acc_ref):
    # Grid: (batch_tile i, reduction tile k).  acc_ref: (bm, H_pad) f32 scratch.
    # x_ref:  (bm, tk)         flattened (padded) image K-slice
    # w1_ref: (tk, H_pad)      first linear weight K-slice (zero padded)
    # b1_ref: (1, H_pad)       first linear bias
    # w2_ref: (H_pad, Z_pad)   second linear weight
    # b2_ref: (1, Z_pad)       second linear bias
    # mu_ref: (bm, Z_pad)      lane-dense output tile
    k = pl.program_id(1)

    @pl.when(k == 0)
    def _():
        acc_ref[...] = jnp.zeros_like(acc_ref)

    acc_ref[...] += jnp.dot(x_ref[...], w1_ref[...],
                            preferred_element_type=jnp.float32)

    @pl.when(k == pl.num_programs(1) - 1)
    def _():
        # bias + ReLU in f32 on the VPU accumulator, then the tiny second matmul.
        h = jnp.maximum(acc_ref[...] + b1_ref[...], 0.0)
        mu = jnp.dot(h.astype(w2_ref.dtype), w2_ref[...],
                     preferred_element_type=jnp.float32) + b2_ref[...]
        mu_ref[...] = mu.astype(mu_ref.dtype)


def _tile_ceilings():
    """Per-generation tile ceilings derived from VMEM capacity."""
    try:
        vmem = pltpu.get_tpu_info().vmem_capacity_bytes
    except Exception:  # interpret mode / unknown chip
        vmem = 64 << 20
    if vmem >= (128 << 20):      # v5e / v6e: 128 MiB VMEM
        return 1024, 256          # (tk_max, bm_max)
    return 512, 128               # v7x: 64 MiB VMEM -> smaller tiles, 2 TCs


def _pick_bm(b_padded, bm_max, sublane):
    """Pick the batch tile that minimizes dead padded rows (ties -> bigger tile)."""
    # Give the v7x megacore >=2 batch tiles whenever the batch is big enough
    # (harmless on single-TC v5e/v6e: per-step overhead is only ~0.35 us).
    if b_padded >= 2 * sublane:
        bm_max = min(bm_max, _round_up(-(-b_padded // 2), sublane))
    cands = [c for c in (512, 256, 128, 64, 32, 16, 8)
             if c % sublane == 0 and c <= bm_max]
    if not cands:
        return sublane
    best_c, best_waste = None, None
    for c in cands:                       # largest first -> ties keep the biggest
        waste = _round_up(b_padded, c) - b_padded
        if best_waste is None or waste < best_waste:
            best_c, best_waste = c, waste
    return best_c


def prepare_encoder_params(w1, b1, w2, b2, *, use_bf16=False, tk_max=None):
    """Pad (and optionally bf16-cast) the parameters ONCE.

    w1: (D, hidden), b1: (1, hidden), w2: (hidden, z_dim), b2: (1, z_dim).
    Zero padding is mathematically inert; encoder_forward slices mu[:B, :z_dim].
    """
    if tk_max is None:
        tk_max, _ = _tile_ceilings()
    D, H = w1.shape
    Z = w2.shape[1]
    tk = min(_round_up(D, 128), tk_max)   # K tile (multiple of 128)
    D_pad = _round_up(D, tk)
    H_pad = _round_up(H, 128)             # 400 -> 512: no masked lane group
    Z_pad = _round_up(Z, 128)             # 8 -> 128: lane-dense output stores
    wdt = jnp.bfloat16 if use_bf16 else jnp.float32
    return dict(
        w1=jnp.pad(w1.astype(wdt), ((0, D_pad - D), (0, H_pad - H))),
        b1=jnp.pad(b1.astype(jnp.float32), ((0, 0), (0, H_pad - H))),
        w2=jnp.pad(w2.astype(wdt), ((0, H_pad - H), (0, Z_pad - Z))),
        b2=jnp.pad(b2.astype(jnp.float32), ((0, 0), (0, Z_pad - Z))),
        D=D, Z=Z, tk=tk, D_pad=D_pad, H_pad=H_pad, Z_pad=Z_pad,
        use_bf16=use_bf16,
    )


def encoder_forward(x_nchw, params, *, bm_max=None):
    """x_nchw: (B, C, H, W). params: output of prepare_encoder_params.
    Returns mu: (B, z_dim) float32."""
    if bm_max is None:
        _, bm_max = _tile_ceilings()
    B = x_nchw.shape[0]
    x_flat = x_nchw.reshape(B, -1)                    # PyTorch x.view(B, -1)
    D = x_flat.shape[1]
    assert D == params["D"], "image_shape does not match prepared parameters"

    use_bf16 = params["use_bf16"]
    tk, D_pad = params["tk"], params["D_pad"]
    H_pad, Z_pad, Z = params["H_pad"], params["Z_pad"], params["Z"]

    sublane = 16 if use_bf16 else 8                   # bf16 packs 2 rows/sublane
    B_sub = _round_up(B, sublane)
    bm = _pick_bm(B_sub, bm_max, sublane)
    B_pad = _round_up(B_sub, bm)

    xdt = jnp.bfloat16 if use_bf16 else jnp.float32
    # Cast before padding so the single pad copy moves half the bytes in bf16 mode.
    x_p = jnp.pad(x_flat.astype(xdt), ((0, B_pad - B), (0, D_pad - D)))

    w1_p, b1_p, w2_p, b2_p = params["w1"], params["b1"], params["w2"], params["b2"]

    n_bt = B_pad // bm
    n_kt = D_pad // tk

    # VMEM budget from actual tiles (x2 slack + 4 MiB), never near the physical cap.
    x_it = x_p.dtype.itemsize
    w_it = w1_p.dtype.itemsize
    vmem_needed = (
        2 * bm * tk * x_it            # x tile, double buffered
        + 2 * tk * H_pad * w_it       # w1 tile, double buffered
        + 1 * H_pad * 4               # b1, single buffered
        + 1 * H_pad * Z_pad * w_it    # w2, single buffered
        + 1 * Z_pad * 4               # b2, single buffered
        + 2 * bm * Z_pad * 4          # out tile, double buffered
        + bm * H_pad * 4              # accumulator scratch
    )
    vmem_limit = min(int(vmem_needed) * 2 + (4 << 20), 48 << 20)

    flops = 2 * B_pad * D_pad * H_pad + 2 * B_pad * H_pad * Z_pad
    bytes_accessed = int(
        x_p.size * x_p.dtype.itemsize
        + w1_p.size * w1_p.dtype.itemsize + b1_p.size * b1_p.dtype.itemsize
        + w2_p.size * w2_p.dtype.itemsize + b2_p.size * b2_p.dtype.itemsize
        + B_pad * Z_pad * 4
    )
    cost = pl.CostEstimate(flops=flops, transcendentals=0,
                           bytes_accessed=bytes_accessed)

    mu_pad = pl.pallas_call(
        encoder_kernel,
        out_shape=jax.ShapeDtypeStruct((B_pad, Z_pad), jnp.float32),
        grid=(n_bt, n_kt),
        in_specs=[
            pl.BlockSpec((bm, tk), lambda i, k: (i, k)),        # x K-slice per batch tile
            pl.BlockSpec((tk, H_pad), lambda i, k: (k, 0)),     # w1 K-slice (pipelined)
            pl.BlockSpec((1, H_pad), lambda i, k: (0, 0),
                         pipeline_mode=pl.Buffered(1)),         # b1 (constant -> 1 buffer)
            pl.BlockSpec((H_pad, Z_pad), lambda i, k: (0, 0),
                         pipeline_mode=pl.Buffered(1)),         # w2 (constant -> 1 buffer)
            pl.BlockSpec((1, Z_pad), lambda i, k: (0, 0),
                         pipeline_mode=pl.Buffered(1)),         # b2 (constant -> 1 buffer)
        ],
        out_specs=pl.BlockSpec((bm, Z_pad), lambda i, k: (i, 0)),
        scratch_shapes=[pltpu.VMEM((bm, H_pad), jnp.float32)],  # f32 accumulator
        compiler_params=pltpu.CompilerParams(
            dimension_semantics=("parallel", "arbitrary"),      # batch sharded on v7x
            vmem_limit_bytes=vmem_limit),
        cost_estimate=cost,
    )(x_p, w1_p, b1_p, w2_p, b2_p)

    # Strip padded batch rows and padded latent columns.
    return mu_pad[:B, :Z]


def init_encoder_params(key, image_shape, z_dim, hidden_dim=400):
    """PyTorch nn.Linear-style init: U(-1/sqrt(fan_in), 1/sqrt(fan_in))."""
    in_dim = int(np.prod(image_shape))
    k1, k2, k3, k4 = jax.random.split(key, 4)
    bound1 = 1.0 / np.sqrt(in_dim)
    bound2 = 1.0 / np.sqrt(hidden_dim)
    w1 = jax.random.uniform(k1, (in_dim, hidden_dim), jnp.float32, -bound1, bound1)
    b1 = jax.random.uniform(k2, (1, hidden_dim), jnp.float32, -bound1, bound1)
    w2 = jax.random.uniform(k3, (hidden_dim, z_dim), jnp.float32, -bound2, bound2)
    b2 = jax.random.uniform(k4, (hidden_dim and hidden_dim, z_dim), jnp.float32, -bound2, bound2)[:1] \
        if False else jax.random.uniform(k4, (1, z_dim), jnp.float32, -bound2, bound2)
    return w1, b1, w2, b2


if __name__ == "__main__":
    key = jax.random.PRNGKey(0)

    # --- Case 1: small shapes consistent with the module: image (1,16,16), z_dim=8, B=2.
    B, image_shape, z_dim = 2, (1, 16, 16), 8
    kx, kp, kx2, kp2 = jax.random.split(key, 4)
    x = jax.random.normal(kx, (B,) + image_shape, dtype=jnp.float32)
    w1, b1, w2, b2 = init_encoder_params(kp, image_shape, z_dim)

    params_f32 = prepare_encoder_params(w1, b1, w2, b2, use_bf16=False)
    mu = jax.block_until_ready(encoder_forward(x, params_f32))
    ref = jnp.maximum(x.reshape(B, -1) @ w1 + b1, 0.0) @ w2 + b2
    assert mu.shape == (B, z_dim)
    np.testing.assert_allclose(np.asarray(mu), np.asarray(ref), rtol=1e-5, atol=1e-5)

    # bf16 MXU path (wins on all generations; looser tolerance since operands are bf16).
    params_bf16 = prepare_encoder_params(w1, b1, w2, b2, use_bf16=True)
    mu_bf16 = jax.block_until_ready(encoder_forward(x, params_bf16))
    np.testing.assert_allclose(np.asarray(mu_bf16), np.asarray(ref), rtol=2e-2, atol=2e-2)

    # --- Case 2: MNIST-like image (1,28,28), odd batch -> exercises multi-step K-tiling
    #             (D=784 -> D_pad=1024 with tk=512 on v7x) and batch-row slicing.
    B2, image_shape2 = 3, (1, 28, 28)
    x2 = jax.random.normal(kx2, (B2,) + image_shape2, dtype=jnp.float32)
    w1b, b1b, w2b, b2b = init_encoder_params(kp2, image_shape2, z_dim)
    params2 = prepare_encoder_params(w1b, b1b, w2b, b2b, use_bf16=False)
    mu2 = jax.block_until_ready(encoder_forward(x2, params2))
    ref2 = jnp.maximum(x2.reshape(B2, -1) @ w1b + b1b, 0.0) @ w2b + b2b
    assert mu2.shape == (B2, z_dim)
    np.testing.assert_allclose(np.asarray(mu2), np.asarray(ref2), rtol=1e-5, atol=1e-5)

    print("KERNEL_OK")
</pallas_src>

<mosaic_0001>
module attributes {stable_mosaic.version = 11 : i64} {
  func.func @encoder_kernel(%arg0: i32, %arg1: i32, %arg2: memref<8x256xf32, #tpu.memory_space<vmem>>, %arg3: memref<256x512xf32, #tpu.memory_space<vmem>>, %arg4: memref<1x512xf32, #tpu.memory_space<vmem>>, %arg5: memref<512x128xf32, #tpu.memory_space<vmem>>, %arg6: memref<1x128xf32, #tpu.memory_space<vmem>>, %arg7: memref<8x128xf32, #tpu.memory_space<vmem>>, %arg8: memref<8x512xf32, #tpu.memory_space<vmem>>) attributes {dimension_semantics = [#tpu.dimension_semantics<parallel>, #tpu.dimension_semantics<arbitrary>], iteration_bounds = array<i64: 1, 1>, scalar_prefetch = 0 : i64, scratch_operands = 1 : i64, tpu.core_type = #tpu.core_type<tc>, window_params = [{transform_indices = @transform_0, window_bounds = array<i64: 8, 256>}, {transform_indices = @transform_1, window_bounds = array<i64: 256, 512>}, {pipeline_mode = #tpu.pipeline_mode<synchronous>, transform_indices = @transform_2, window_bounds = array<i64: 1, 512>}, {pipeline_mode = #tpu.pipeline_mode<synchronous>, transform_indices = @transform_3, window_bounds = array<i64: 512, 128>}, {pipeline_mode = #tpu.pipeline_mode<synchronous>, transform_indices = @transform_4, window_bounds = array<i64: 1, 128>}, {transform_indices = @transform_5, window_bounds = array<i64: 8, 128>}]} {
    %c0_i32 = arith.constant 0 : i32
    %0 = arith.cmpi eq, %arg1, %c0_i32 : i32
    %1 = arith.extui %0 : i1 to i32
    %c0_i32_0 = arith.constant 0 : i32
    %2 = arith.cmpi ne, %1, %c0_i32_0 : i32
    scf.if %2 {
      %cst_10 = arith.constant 0.000000e+00 : f32
      %12 = vector.broadcast %cst_10 : f32 to vector<8x512xf32>
      %c0_11 = arith.constant 0 : index
      %c0_12 = arith.constant 0 : index
      %13 = vector.load %arg8[%c0_11, %c0_12] : memref<8x512xf32, #tpu.memory_space<vmem>>, vector<8x512xf32>
      tpu.vector_store %arg8[%c0_11, %c0_12], %12 {strides = array<i32>} : memref<8x512xf32, #tpu.memory_space<vmem>>, vector<8x512xf32>,
    } else {
    }
    %c0 = arith.constant 0 : index
    %c0_1 = arith.constant 0 : index
    %3 = vector.load %arg8[%c0, %c0_1] : memref<8x512xf32, #tpu.memory_space<vmem>>, vector<8x512xf32>
    %c0_2 = arith.constant 0 : index
    %c0_3 = arith.constant 0 : index
    %4 = vector.load %arg2[%c0_2, %c0_3] : memref<8x256xf32, #tpu.memory_space<vmem>>, vector<8x256xf32>
    %c0_4 = arith.constant 0 : index
    %c0_5 = arith.constant 0 : index
    %5 = vector.load %arg3[%c0_4, %c0_5] : memref<256x512xf32, #tpu.memory_space<vmem>>, vector<256x512xf32>
    %cst = arith.constant dense<0.000000e+00> : vector<8x512xf32>
    %6 = tpu.matmul %4, %5, %cst {dimension_numbers = #tpu.dot_dimension_numbers<[1], [0], [0], [1], [0, 0, 1, 1], [], []>} : vector<8x256xf32>, vector<256x512xf32>, vector<8x512xf32> -> vector<8x512xf32>
    %7 = arith.addf %3, %6 : vector<8x512xf32>
    %c0_6 = arith.constant 0 : index
    %c0_7 = arith.constant 0 : index
    %8 = vector.load %arg8[%c0_6, %c0_7] : memref<8x512xf32, #tpu.memory_space<vmem>>, vector<8x512xf32>
    tpu.vector_store %arg8[%c0_6, %c0_7], %7 {strides = array<i32>} : memref<8x512xf32, #tpu.memory_space<vmem>>, vector<8x512xf32>,
    %c0_i32_8 = arith.constant 0 : i32
    %9 = arith.cmpi eq, %arg1, %c0_i32_8 : i32
    %10 = arith.extui %9 : i1 to i32
    %c0_i32_9 = arith.constant 0 : i32
    %11 = arith.cmpi ne, %10, %c0_i32_9 : i32
    scf.if %11 {
      %c0_10 = arith.constant 0 : index
      %c0_11 = arith.constant 0 : index
      %12 = vector.load %arg8[%c0_10, %c0_11] : memref<8x512xf32, #tpu.memory_space<vmem>>, vector<8x512xf32>
      %c0_12 = arith.constant 0 : index
      %c0_13 = arith.constant 0 : index
      %13 = vector.load %arg4[%c0_12, %c0_13] : memref<1x512xf32, #tpu.memory_space<vmem>>, vector<1x512xf32>
      %14 = vector.broadcast %13 : vector<1x512xf32> to vector<8x512xf32>
      %15 = arith.addf %12, %14 : vector<8x512xf32>
      %cst_14 = arith.constant 0.000000e+00 : f32
      %16 = vector.broadcast %cst_14 : f32 to vector<8x512xf32>
      %17 = arith.maximumf %15, %16 : vector<8x512xf32>
      %c0_15 = arith.constant 0 : index
      %c0_16 = arith.constant 0 : index
      %18 = vector.load %arg5[%c0_15, %c0_16] : memref<512x128xf32, #tpu.memory_space<vmem>>, vector<512x128xf32>
      %cst_17 = arith.constant dense<0.000000e+00> : vector<8x128xf32>
      %19 = tpu.matmul %17, %18, %cst_17 {dimension_numbers = #tpu.dot_dimension_numbers<[1], [0], [0], [1], [0, 0, 1, 1], [], []>} : vector<8x512xf32>, vector<512x128xf32>, vector<8x128xf32> -> vector<8x128xf32>
      %c0_18 = arith.constant 0 : index
      %c0_19 = arith.constant 0 : index
      %20 = vector.load %arg6[%c0_18, %c0_19] : memref<1x128xf32, #tpu.memory_space<vmem>>, vector<1x128xf32>
      %21 = vector.broadcast %20 : vector<1x128xf32> to vector<8x128xf32>
      %22 = arith.addf %19, %21 : vector<8x128xf32>
      %c0_20 = arith.constant 0 : index
      %c0_21 = arith.constant 0 : index
      %23 = vector.load %arg7[%c0_20, %c0_21] : memref<8x128xf32, #tpu.memory_space<vmem>>, vector<8x128xf32>
      tpu.vector_store %arg7[%c0_20, %c0_21], %22 {strides = array<i32>} : memref<8x128xf32, #tpu.memory_space<vmem>>, vector<8x128xf32>,
    } else {
    }
    return
  }
  func.func @transform_0(%arg0: i32, %arg1: i32) -> (i32, i32) {
    %c0_i32 = arith.constant 0 : i32
    return %arg0, %arg1 : i32, i32
  }
  func.func @transform_1(%arg0: i32, %arg1: i32) -> (i32, i32) {
    %c0_i32 = arith.constant 0 : i32
    %c0_i32_0 = arith.constant 0 : i32
    return %arg1, %c0_i32 : i32, i32
  }
  func.func @transform_2(%arg0: i32, %arg1: i32) -> (i32, i32) {
    %c0_i32 = arith.constant 0 : i32
    %c0_i32_0 = arith.constant 0 : i32
    %c0_i32_1 = arith.constant 0 : i32
    return %c0_i32, %c0_i32_0 : i32, i32
  }
  func.func @transform_3(%arg0: i32, %arg1: i32) -> (i32, i32) {
    %c0_i32 = arith.constant 0 : i32
    %c0_i32_0 = arith.constant 0 : i32
    %c0_i32_1 = arith.constant 0 : i32
    return %c0_i32, %c0_i32_0 : i32, i32
  }
  func.func @transform_4(%arg0: i32, %arg1: i32) -> (i32, i32) {
    %c0_i32 = arith.constant 0 : i32
    %c0_i32_0 = arith.constant 0 : i32
    %c0_i32_1 = arith.constant 0 : i32
    return %c0_i32, %c0_i32_0 : i32, i32
  }
  func.func @transform_5(%arg0: i32, %arg1: i32) -> (i32, i32) {
    %c0_i32 = arith.constant 0 : i32
    %c0_i32_0 = arith.constant 0 : i32
    return %arg0, %c0_i32 : i32, i32
  }
}

</mosaic_0001>

<bundles_post_ra>
// kernel: tpu_custom_call.1
= control target key start
LH: loop header
LB: loop body
LE: loop exit
PB: predicated region body
PF: predicated region fallthrough
CT: control target
= control target key end

     0   :  { %10 = vsyncpa [#allocation4], 0  ;;  %s778_s0 = inlined_call_operand.hbm [shape: f32[8,256], index: 0, kind: input, shape index: {}]   ;;  %s779_s1 = inlined_call_operand.hbm [shape: f32[256,512], index: 1, kind: input, shape index: {}]   ;;  %s780_s2 = inlined_call_operand.hbm [shape: f32[1,512], index: 2, kind: input, shape index: {}]   ;;  %s781_s3 = inlined_call_operand.hbm [shape: f32[512,128], index: 3, kind: input, shape index: {}]   ;;  %s782_s4 = inlined_call_operand.vmem [shape: f32[1,128], index: 4, kind: input, shape index: {}]   ;;  %s783_s5 = inlined_call_operand.hbm [shape: f32[8,128], index: 5, kind: output, shape index: {}]  }
   0x1   :  { %11 = vsyncpa [#allocation7], 0 }
   0x2   :  { %12 = vsyncpa [#allocation10], 0  ;;  %s29_s20 = sshll.u32 %s779_s1, 4  ;;  %s30_s20 = int_to_ptr.hbm [resolvable:$true] %s29_s20 }
   0x3   :  { %13 = vsyncpa [#allocation5], 0  ;;  %s721_s21 = smov [#allocation6]   ;;  %s19_s25 = sshll.u32 %s778_s0, 4  ;;  %s20_s25 = int_to_ptr.hbm [resolvable:$true] %s19_s25 }
   0x4   :  { %s31_s22 = sshll.u32 %s721_s21, 4  ;;  %s722_s26 = smov 512   ;;  %s32_s22 = int_to_ptr.vmem [resolvable:$true] %s31_s22 }
   0x5   :  { %s723_s27 = smov 32   ;;  %s724_s28 = smov [#allocation3]  }
   0x6   :  { %37 = dma.hbm_to_vmem [thread:$0]  %s30_s20, 16384, %s32_s22, [#allocation7], %s722_s26, %s722_s26, %s723_s27  }
   0x7   :  { %s21_s29 = sshll.u32 %s724_s28, 4  ;;  %s43_s7 = sshll.u32 %s780_s2, 4  ;;  %s22_s29 = int_to_ptr.vmem [resolvable:$true] %s21_s29  ;;  %s44_s7 = int_to_ptr.hbm [resolvable:$true] %s43_s7 }
   0x8   :  { %24 = dma.hbm_to_vmem [thread:$0]  %s20_s25, 256, %s22_s29, [#allocation4]  }
   0x9   :  { %s53_s9 = sshll.u32 %s781_s3, 4  ;;  %s725_s10 = smov [#allocation8]   ;;  %s54_s9 = int_to_ptr.hbm [resolvable:$true] %s53_s9 }
   0xa   :  { %s45_s11 = sshll.u32 %s725_s10, 4  ;;  %s726_s0 = smov [#allocation9]   ;;  %s46_s11 = int_to_ptr.vmem [resolvable:$true] %s45_s11 }
   0xb   :  { %48 = dma.hbm_to_vmem [thread:$0]  %s44_s7, 64, %s46_s11, [#allocation7]  }
   0xc   :  { %s55_s12 = sshll.u32 %s726_s0, 4  ;;  %s727_s13 = smov 128   ;;  %s56_s12 = int_to_ptr.vmem [resolvable:$true] %s55_s12 }
   0xd   :  { %s728_s14 = smov 8  }
   0xe   :  { %61 = dma.hbm_to_vmem [thread:$0]  %s54_s9, 8192, %s56_s12, [#allocation10], %s727_s13, %s727_s13, %s728_s14  }
   0xf   :  { %713 = dma.done.wait [#allocation4], 256  }
  0x10   :  { %714 = vsyncadd [#allocation4], 4294967040 }
  0x11   :  { %715 = dma.done.wait [#allocation7], 16448  }
  0x12   :  { %716 = vsyncadd [#allocation7], 4294950848 }
  0x13   :  { %717 = dma.done.wait [#allocation10], 8192  }
  0x14   :  { %718 = vsyncadd [#allocation10], 4294959104  ;;  %v154_v0 = vld [vmem:[#allocation6 + $0x1e0] sm:$0xff]  ;;  %v155_v2 = vld [vmem:[#allocation6 + $0x1e8] sm:$0xff]  ;;  %s729_s15 = smov [#allocation11]   ;;  %s571_s19 = sshll.u32 %s783_s5, 4  ;;  %s572_s19 = int_to_ptr.hbm [resolvable:$true] %s571_s19 }
  0x15   :  { %v218_v1 = vld [vmem:[#allocation6 + $0x3e0] sm:$0xff]  ;;  %222 = vmatpush.msra.mxu0 %v154_v0  ;;  %v219_v3 = vld [vmem:[#allocation6 + $0x3e8] sm:$0xff]  ;;  %262 = vmatpush.msra.mxu2 %v155_v2  ;;  %v156_v0 = vld [vmem:[#allocation6 + $0x1f0] sm:$0xff]  ;;  %s569_s16 = sshll.u32 %s729_s15, 4  ;;  %s570_s16 = int_to_ptr.vmem [resolvable:$true] %s569_s16 }
  0x16   :  { %242 = vmatpush.msra.mxu1 %v218_v1  ;;  %v150_v4 = vld [vmem:[#allocation6 + $0x1c0] sm:$0xff]  ;;  %282 = vmatpush.msra.mxu3 %v219_v3  ;;  %v151_v6 = vld [vmem:[#allocation6 + $0x1c8] sm:$0xff]  ;;  %v220_v1 = vld [vmem:[#allocation6 + $0x3f0] sm:$0xff] }
  0x17   :  { %v214_v5 = vld [vmem:[#allocation6 + $0x3c0] sm:$0xff]  ;;  %v215_v7 = vld [vmem:[#allocation6 + $0x3c8] sm:$0xff]  ;;  %223 = vmatpush.msra.mxu0 %v150_v4  ;;  %263 = vmatpush.msra.mxu2 %v151_v6  ;;  %v157_v2 = vld [vmem:[#allocation6 + $0x1f8] sm:$0xff] }
  0x18   :  { %v146_v8 = vld [vmem:[#allocation6 + $0x1a0] sm:$0xff]  ;;  %243 = vmatpush.msra.mxu1 %v214_v5  ;;  %v147_v10 = vld [vmem:[#allocation6 + $0x1a8] sm:$0xff]  ;;  %283 = vmatpush.msra.mxu3 %v215_v7  ;;  %v221_v3 = vld [vmem:[#allocation6 + $0x3f8] sm:$0xff] }
  0x19   :  { %v210_v9 = vld [vmem:[#allocation6 + $0x3a0] sm:$0xff]  ;;  %v211_v11 = vld [vmem:[#allocation6 + $0x3a8] sm:$0xff]  ;;  %224 = vmatpush.msra.mxu0 %v146_v8  ;;  %264 = vmatpush.msra.mxu2 %v147_v10  ;;  %v152_v4 = vld [vmem:[#allocation6 + $0x1d0] sm:$0xff] }
  0x1a   :  { %v142_v12 = vld [vmem:[#allocation6 + $0x180] sm:$0xff]  ;;  %244 = vmatpush.msra.mxu1 %v210_v9  ;;  %v143_v14 = vld [vmem:[#allocation6 + $0x188] sm:$0xff]  ;;  %284 = vmatpush.msra.mxu3 %v211_v11  ;;  %v216_v5 = vld [vmem:[#allocation6 + $0x3d0] sm:$0xff] }
  0x1b   :  { %v206_v13 = vld [vmem:[#allocation6 + $0x380] sm:$0xff]  ;;  %v207_v15 = vld [vmem:[#allocation6 + $0x388] sm:$0xff]  ;;  %225 = vmatpush.msra.mxu0 %v142_v12  ;;  %265 = vmatpush.msra.mxu2 %v143_v14  ;;  %v153_v6 = vld [vmem:[#allocation6 + $0x1d8] sm:$0xff] }
  0x1c   :  { %v138_v16 = vld [vmem:[#allocation6 + $0x160] sm:$0xff]  ;;  %245 = vmatpush.msra.mxu1 %v206_v13  ;;  %v139_v18 = vld [vmem:[#allocation6 + $0x168] sm:$0xff]  ;;  %285 = vmatpush.msra.mxu3 %v207_v15  ;;  %v217_v7 = vld [vmem:[#allocation6 + $0x3d8] sm:$0xff] }
  0x1d   :  { %v202_v17 = vld [vmem:[#allocation6 + $0x360] sm:$0xff]  ;;  %v203_v19 = vld [vmem:[#allocation6 + $0x368] sm:$0xff]  ;;  %226 = vmatpush.msra.mxu0 %v138_v16  ;;  %266 = vmatpush.msra.mxu2 %v139_v18  ;;  %v148_v8 = vld [vmem:[#allocation6 + $0x1b0] sm:$0xff] }
  0x1e   :  { %v134_v20 = vld [vmem:[#allocation6 + $0x140] sm:$0xff]  ;;  %246 = vmatpush.msra.mxu1 %v202_v17  ;;  %v135_v22 = vld [vmem:[#allocation6 + $0x148] sm:$0xff]  ;;  %286 = vmatpush.msra.mxu3 %v203_v19  ;;  %v212_v9 = vld [vmem:[#allocation6 + $0x3b0] sm:$0xff] }
  0x1f   :  { %v198_v21 = vld [vmem:[#allocation6 + $0x340] sm:$0xff]  ;;  %v199_v23 = vld [vmem:[#allocation6 + $0x348] sm:$0xff]  ;;  %227 = vmatpush.msra.mxu0 %v134_v20  ;;  %267 = vmatpush.msra.mxu2 %v135_v22  ;;  %v149_v10 = vld [vmem:[#allocation6 + $0x1b8] sm:$0xff] }
  0x20   :  { %v130_v24 = vld [vmem:[#allocation6 + $0x120] sm:$0xff]  ;;  %247 = vmatpush.msra.mxu1 %v198_v21  ;;  %v131_v26 = vld [vmem:[#allocation6 + $0x128] sm:$0xff]  ;;  %287 = vmatpush.msra.mxu3 %v199_v23  ;;  %v213_v11 = vld [vmem:[#allocation6 + $0x3b8] sm:$0xff] }
  0x21   :  { %v194_v25 = vld [vmem:[#allocation6 + $0x320] sm:$0xff]  ;;  %v195_v27 = vld [vmem:[#allocation6 + $0x328] sm:$0xff]  ;;  %228 = vmatpush.msra.mxu0 %v130_v24  ;;  %268 = vmatpush.msra.mxu2 %v131_v26  ;;  %v144_v12 = vld [vmem:[#allocation6 + $0x190] sm:$0xff] }
  0x22   :  { %v126_v28 = vld [vmem:[#allocation6 + $0x100] sm:$0xff]  ;;  %248 = vmatpush.msra.mxu1 %v194_v25  ;;  %v127_v30 = vld [vmem:[#allocation6 + $0x108] sm:$0xff]  ;;  %288 = vmatpush.msra.mxu3 %v195_v27  ;;  %v208_v13 = vld [vmem:[#allocation6 + $0x390] sm:$0xff] }
  0x23   :  { %v190_v29 = vld [vmem:[#allocation6 + $0x300] sm:$0xff]  ;;  %v191_v31 = vld [vmem:[#allocation6 + $0x308] sm:$0xff]  ;;  %229 = vmatpush.msra.mxu0 %v126_v28  ;;  %269 = vmatpush.msra.mxu2 %v127_v30  ;;  %v145_v14 = vld [vmem:[#allocation6 + $0x198] sm:$0xff] }
  0x24   :  { %v122_v32 = vld [vmem:[#allocation6 + $0xe0] sm:$0xff]  ;;  %249 = vmatpush.msra.mxu1 %v190_v29  ;;  %v123_v34 = vld [vmem:[#allocation6 + $0xe8] sm:$0xff]  ;;  %289 = vmatpush.msra.mxu3 %v191_v31  ;;  %v209_v15 = vld [vmem:[#allocation6 + $0x398] sm:$0xff] }
  0x25   :  { %v186_v33 = vld [vmem:[#allocation6 + $0x2e0] sm:$0xff]  ;;  %v187_v35 = vld [vmem:[#allocation6 + $0x2e8] sm:$0xff]  ;;  %230 = vmatpush.msra.mxu0 %v122_v32  ;;  %270 = vmatpush.msra.mxu2 %v123_v34  ;;  %v140_v16 = vld [vmem:[#allocation6 + $0x170] sm:$0xff] }
  0x26   :  { %v118_v36 = vld [vmem:[#allocation6 + $0xc0] sm:$0xff]  ;;  %250 = vmatpush.msra.mxu1 %v186_v33  ;;  %v119_v38 = vld [vmem:[#allocation6 + $0xc8] sm:$0xff]  ;;  %290 = vmatpush.msra.mxu3 %v187_v35  ;;  %v204_v17 = vld [vmem:[#allocation6 + $0x370] sm:$0xff] }
  0x27   :  { %v182_v37 = vld [vmem:[#allocation6 + $0x2c0] sm:$0xff]  ;;  %v183_v39 = vld [vmem:[#allocation6 + $0x2c8] sm:$0xff]  ;;  %231 = vmatpush.msra.mxu0 %v118_v36  ;;  %271 = vmatpush.msra.mxu2 %v119_v38  ;;  %v141_v18 = vld [vmem:[#allocation6 + $0x178] sm:$0xff] }
  0x28   :  { %v114_v40 = vld [vmem:[#allocation6 + $0xa0] sm:$0xff]  ;;  %251 = vmatpush.msra.mxu1 %v182_v37  ;;  %v115_v42 = vld [vmem:[#allocation6 + $0xa8] sm:$0xff]  ;;  %291 = vmatpush.msra.mxu3 %v183_v39  ;;  %v205_v19 = vld [vmem:[#allocation6 + $0x378] sm:$0xff] }
  0x29   :  { %v178_v41 = vld [vmem:[#allocation6 + $0x2a0] sm:$0xff]  ;;  %v179_v43 = vld [vmem:[#allocation6 + $0x2a8] sm:$0xff]  ;;  %232 = vmatpush.msra.mxu0 %v114_v40  ;;  %272 = vmatpush.msra.mxu2 %v115_v42  ;;  %v136_v20 = vld [vmem:[#allocation6 + $0x150] sm:$0xff] }
  0x2a   :  { %v110_v44 = vld [vmem:[#allocation6 + $0x80] sm:$0xff]  ;;  %252 = vmatpush.msra.mxu1 %v178_v41  ;;  %v111_v46 = vld [vmem:[#allocation6 + $0x88] sm:$0xff]  ;;  %292 = vmatpush.msra.mxu3 %v179_v43  ;;  %v200_v21 = vld [vmem:[#allocation6 + $0x350] sm:$0xff] }
  0x2b   :  { %v174_v45 = vld [vmem:[#allocation6 + $0x280] sm:$0xff]  ;;  %v175_v47 = vld [vmem:[#allocation6 + $0x288] sm:$0xff]  ;;  %233 = vmatpush.msra.mxu0 %v110_v44  ;;  %273 = vmatpush.msra.mxu2 %v111_v46  ;;  %v137_v22 = vld [vmem:[#allocation6 + $0x158] sm:$0xff] }
  0x2c   :  { %v106_v48 = vld [vmem:[#allocation6 + $0x60] sm:$0xff]  ;;  %253 = vmatpush.msra.mxu1 %v174_v45  ;;  %v107_v50 = vld [vmem:[#allocation6 + $0x68] sm:$0xff]  ;;  %293 = vmatpush.msra.mxu3 %v175_v47  ;;  %v201_v23 = vld [vmem:[#allocation6 + $0x358] sm:$0xff] }
  0x2d   :  { %v170_v49 = vld [vmem:[#allocation6 + $0x260] sm:$0xff]  ;;  %v171_v51 = vld [vmem:[#allocation6 + $0x268] sm:$0xff]  ;;  %234 = vmatpush.msra.mxu0 %v106_v48  ;;  %274 = vmatpush.msra.mxu2 %v107_v50  ;;  %v132_v24 = vld [vmem:[#allocation6 + $0x130] sm:$0xff] }
  0x2e   :  { %v102_v52 = vld [vmem:[#allocation6 + $0x40] sm:$0xff]  ;;  %254 = vmatpush.msra.mxu1 %v170_v49  ;;  %v103_v54 = vld [vmem:[#allocation6 + $0x48] sm:$0xff]  ;;  %294 = vmatpush.msra.mxu3 %v171_v51  ;;  %v196_v25 = vld [vmem:[#allocation6 + $0x330] sm:$0xff] }
  0x2f   :  { %v166_v53 = vld [vmem:[#allocation6 + $0x240] sm:$0xff]  ;;  %v167_v55 = vld [vmem:[#allocation6 + $0x248] sm:$0xff]  ;;  %235 = vmatpush.msra.mxu0 %v102_v52  ;;  %275 = vmatpush.msra.mxu2 %v103_v54  ;;  %v133_v26 = vld [vmem:[#allocation6 + $0x138] sm:$0xff] }
  0x30   :  { %v98_v56 = vld [vmem:[#allocation6 + $0x20] sm:$0xff]  ;;  %255 = vmatpush.msra.mxu1 %v166_v53  ;;  %v99_v58 = vld [vmem:[#allocation6 + $0x28] sm:$0xff]  ;;  %295 = vmatpush.msra.mxu3 %v167_v55  ;;  %v197_v27 = vld [vmem:[#allocation6 + $0x338] sm:$0xff] }
  0x31   :  { %v162_v57 = vld [vmem:[#allocation6 + $0x220] sm:$0xff]  ;;  %v163_v59 = vld [vmem:[#allocation6 + $0x228] sm:$0xff]  ;;  %236 = vmatpush.msra.mxu0 %v98_v56  ;;  %276 = vmatpush.msra.mxu2 %v99_v58  ;;  %v128_v28 = vld [vmem:[#allocation6 + $0x110] sm:$0xff] }
  0x32   :  { %v94_v60 = vld [vmem:[#allocation6] sm:$0xff]  ;;  %256 = vmatpush.msra.mxu1 %v162_v57  ;;  %v95_v62 = vld [vmem:[#allocation6 + $0x8] sm:$0xff]  ;;  %296 = vmatpush.msra.mxu3 %v163_v59  ;;  %v192_v29 = vld [vmem:[#allocation6 + $0x310] sm:$0xff] }
  0x33   :  { %v158_v61 = vld [vmem:[#allocation6 + $0x200] sm:$0xff]  ;;  %v159_v63 = vld [vmem:[#allocation6 + $0x208] sm:$0xff]  ;;  %237 = vmatpush.msra.mxu0 %v94_v60  ;;  %277 = vmatpush.msra.mxu2 %v95_v62  ;;  %v129_v30 = vld [vmem:[#allocation6 + $0x118] sm:$0xff] }
  0x34   :  { %257 = vmatpush.msra.mxu1 %v158_v61  ;;  %297 = vmatpush.msra.mxu3 %v159_v63  ;;  %v193_v31 = vld [vmem:[#allocation6 + $0x318] sm:$0xff]  ;;  %v124_v32 = vld [vmem:[#allocation6 + $0xf0] sm:$0xff] }
  0x35   :  { %302 = vmatpush.msrb.mxu0 %v156_v0  ;;  %342 = vmatpush.msrb.mxu2 %v157_v2  ;;  %v188_v33 = vld [vmem:[#allocation6 + $0x2f0] sm:$0xff]  ;;  %v125_v34 = vld [vmem:[#allocation6 + $0xf8] sm:$0xff] }
  0x36   :  { %322 = vmatpush.msrb.mxu1 %v220_v1  ;;  %362 = vmatpush.msrb.mxu3 %v221_v3  ;;  %v189_v35 = vld [vmem:[#allocation6 + $0x2f8] sm:$0xff]  ;;  %v120_v36 = vld [vmem:[#allocation6 + $0xd0] sm:$0xff] }
  0x37   :  { %303 = vmatpush.msrb.mxu0 %v152_v4  ;;  %343 = vmatpush.msrb.mxu2 %v153_v6  ;;  %v184_v37 = vld [vmem:[#allocation6 + $0x2d0] sm:$0xff]  ;;  %v121_v38 = vld [vmem:[#allocation6 + $0xd8] sm:$0xff] }
  0x38   :  { %323 = vmatpush.msrb.mxu1 %v216_v5  ;;  %363 = vmatpush.msrb.mxu3 %v217_v7  ;;  %v185_v39 = vld [vmem:[#allocation6 + $0x2d8] sm:$0xff]  ;;  %v116_v40 = vld [vmem:[#allocation6 + $0xb0] sm:$0xff] }
  0x39   :  { %304 = vmatpush.msrb.mxu0 %v148_v8  ;;  %344 = vmatpush.msrb.mxu2 %v149_v10  ;;  %v180_v41 = vld [vmem:[#allocation6 + $0x2b0] sm:$0xff]  ;;  %v117_v42 = vld [vmem:[#allocation6 + $0xb8] sm:$0xff] }
  0x3a   :  { %324 = vmatpush.msrb.mxu1 %v212_v9  ;;  %364 = vmatpush.msrb.mxu3 %v213_v11  ;;  %v181_v43 = vld [vmem:[#allocation6 + $0x2b8] sm:$0xff]  ;;  %v112_v44 = vld [vmem:[#allocation6 + $0x90] sm:$0xff] }
  0x3b   :  { %305 = vmatpush.msrb.mxu0 %v144_v12  ;;  %345 = vmatpush.msrb.mxu2 %v145_v14  ;;  %v176_v45 = vld [vmem:[#allocation6 + $0x290] sm:$0xff]  ;;  %v113_v46 = vld [vmem:[#allocation6 + $0x98] sm:$0xff]  ;;  %v427_v14 = vld [vmem:[#allocation9 + $0x60] sm:$0xff] }
  0x3c   :  { %325 = vmatpush.msrb.mxu1 %v208_v13  ;;  %365 = vmatpush.msrb.mxu3 %v209_v15  ;;  %v177_v47 = vld [vmem:[#allocation6 + $0x298] sm:$0xff]  ;;  %v92_v48 = vld [vmem:[#allocation3] sm:$0xff]  ;;  %v443_v15 = vld [vmem:[#allocation9 + $0xe0] sm:$0xff] }
  0x3d   :  { %306 = vmatpush.msrb.mxu0 %v140_v16  ;;  %346 = vmatpush.msrb.mxu2 %v141_v18  ;;  %v93_v49 = vld [vmem:[#allocation3 + $0x8] sm:$0xff]  ;;  %v108_v50 = vld [vmem:[#allocation6 + $0x70] sm:$0xff]  ;;  %v459_v16 = vld [vmem:[#allocation9 + $0x160] sm:$0xff] }
  0x3e   :  { %326 = vmatpush.msrb.mxu1 %v204_v17  ;;  %366 = vmatpush.msrb.mxu3 %v205_v19  ;;  %v172_v51 = vld [vmem:[#allocation6 + $0x270] sm:$0xff]  ;;  %v109_v52 = vld [vmem:[#allocation6 + $0x78] sm:$0xff]  ;;  %v475_v17 = vld [vmem:[#allocation9 + $0x1e0] sm:$0xff] }
  0x3f   :  { %307 = vmatpush.msrb.mxu0 %v136_v20  ;;  %347 = vmatpush.msrb.mxu2 %v137_v22  ;;  %v173_v53 = vld [vmem:[#allocation6 + $0x278] sm:$0xff]  ;;  %v104_v54 = vld [vmem:[#allocation6 + $0x50] sm:$0xff] }
  0x40   :  { %327 = vmatpush.msrb.mxu1 %v200_v21  ;;  %367 = vmatpush.msrb.mxu3 %v201_v23  ;;  %v168_v55 = vld [vmem:[#allocation6 + $0x250] sm:$0xff]  ;;  %v105_v56 = vld [vmem:[#allocation6 + $0x58] sm:$0xff] }
  0x41   :  { %308 = vmatpush.msrb.mxu0 %v132_v24  ;;  %348 = vmatpush.msrb.mxu2 %v133_v26  ;;  %v169_v57 = vld [vmem:[#allocation6 + $0x258] sm:$0xff]  ;;  %v100_v58 = vld [vmem:[#allocation6 + $0x30] sm:$0xff] }
  0x42   :  { %328 = vmatpush.msrb.mxu1 %v196_v25  ;;  %368 = vmatpush.msrb.mxu3 %v197_v27  ;;  %v164_v59 = vld [vmem:[#allocation6 + $0x230] sm:$0xff]  ;;  %v101_v60 = vld [vmem:[#allocation6 + $0x38] sm:$0xff] }
  0x43   :  { %309 = vmatpush.msrb.mxu0 %v128_v28  ;;  %349 = vmatpush.msrb.mxu2 %v129_v30  ;;  %v165_v61 = vld [vmem:[#allocation6 + $0x238] sm:$0xff]  ;;  %v96_v62 = vld [vmem:[#allocation6 + $0x10] sm:$0xff]  ;;  %v423_v28 = vld [vmem:[#allocation9 + $0x40] sm:$0xff] }
  0x44   :  { %329 = vmatpush.msrb.mxu1 %v192_v29  ;;  %369 = vmatpush.msrb.mxu3 %v193_v31  ;;  %v160_v63 = vld [vmem:[#allocation6 + $0x210] sm:$0xff]  ;;  %v97_v0 = vld [vmem:[#allocation6 + $0x18] sm:$0xff]  ;;  %v439_v29 = vld [vmem:[#allocation9 + $0xc0] sm:$0xff] }
  0x45   :  { %310 = vmatpush.msrb.mxu0 %v124_v32  ;;  %350 = vmatpush.msrb.mxu2 %v125_v34  ;;  %v161_v1 = vld [vmem:[#allocation6 + $0x218] sm:$0xff]  ;;  %v428_v10 = vld [vmem:[#allocation9 + $0x68] sm:$0xff]  ;;  %v455_v30 = vld [vmem:[#allocation9 + $0x140] sm:$0xff] }
  0x46   :  { %330 = vmatpush.msrb.mxu1 %v188_v33  ;;  %370 = vmatpush.msrb.mxu3 %v189_v35  ;;  %v430_v2 = vld [vmem:[#allocation9 + $0x78] sm:$0xff]  ;;  %v429_v6 = vld [vmem:[#allocation9 + $0x70] sm:$0xff]  ;;  %v444_v11 = vld [vmem:[#allocation9 + $0xe8] sm:$0xff] }
  0x47   :  { %311 = vmatpush.msrb.mxu0 %v120_v36  ;;  %351 = vmatpush.msrb.mxu2 %v121_v38  ;;  %v446_v3 = vld [vmem:[#allocation9 + $0xf8] sm:$0xff]  ;;  %v445_v7 = vld [vmem:[#allocation9 + $0xf0] sm:$0xff]  ;;  %v460_v12 = vld [vmem:[#allocation9 + $0x168] sm:$0xff] }
  0x48   :  { %331 = vmatpush.msrb.mxu1 %v184_v37  ;;  %371 = vmatpush.msrb.mxu3 %v185_v39  ;;  %v462_v4 = vld [vmem:[#allocation9 + $0x178] sm:$0xff]  ;;  %v461_v8 = vld [vmem:[#allocation9 + $0x170] sm:$0xff]  ;;  %v476_v13 = vld [vmem:[#allocation9 + $0x1e8] sm:$0xff] }
  0x49   :  { %312 = vmatpush.msrb.mxu0 %v116_v40  ;;  %352 = vmatpush.msrb.mxu2 %v117_v42  ;;  %v478_v5 = vld [vmem:[#allocation9 + $0x1f8] sm:$0xff]  ;;  %v477_v9 = vld [vmem:[#allocation9 + $0x1f0] sm:$0xff]  ;;  %v424_v25 = vld [vmem:[#allocation9 + $0x48] sm:$0xff] }
  0x4a   :  { %332 = vmatpush.msrb.mxu1 %v180_v41  ;;  %372 = vmatpush.msrb.mxu3 %v181_v43  ;;  %v426_v18 = vld [vmem:[#allocation9 + $0x58] sm:$0xff]  ;;  %v425_v22 = vld [vmem:[#allocation9 + $0x50] sm:$0xff]  ;;  %v440_v26 = vld [vmem:[#allocation9 + $0xc8] sm:$0xff] }
  0x4b   :  { %313 = vmatpush.msrb.mxu0 %v112_v44  ;;  %353 = vmatpush.msrb.mxu2 %v113_v46  ;;  %v442_v19 = vld [vmem:[#allocation9 + $0xd8] sm:$0xff]  ;;  %v441_v23 = vld [vmem:[#allocation9 + $0xd0] sm:$0xff]  ;;  %v456_v27 = vld [vmem:[#allocation9 + $0x148] sm:$0xff] }
  0x4c   :  { %333 = vmatpush.msrb.mxu1 %v176_v45  ;;  %373 = vmatpush.msrb.mxu3 %v177_v47  ;;  %v458_v20 = vld [vmem:[#allocation9 + $0x158] sm:$0xff]  ;;  %v457_v24 = vld [vmem:[#allocation9 + $0x150] sm:$0xff]  ;;  %v420_v34 = vld [vmem:[#allocation9 + $0x28] sm:$0xff] }
  0x4d   :  { %238 = vmatmul.f32.vlgmr.msra.gmra.mxu0 %v92_v48  ;;  %258 = vmatmul.f32.vlgmr.msra.gmra.mxu1 %v93_v49  ;;  %v474_v21 = vld [vmem:[#allocation9 + $0x1d8] sm:$0xff]  ;;  %v421_v33 = vld [vmem:[#allocation9 + $0x30] sm:$0xff]  ;;  %v419_v38 = vld [vmem:[#allocation9 + $0x20] sm:$0xff] }
  0x4e   :  { %278 = vmatmul.f32.vlgmr.msra.gmra.mxu2 %v92_v48  ;;  %298 = vmatmul.f32.vlgmr.msra.gmra.mxu3 %v93_v49  ;;  %v422_v31 = vld [vmem:[#allocation9 + $0x38] sm:$0xff]  ;;  %v437_v35 = vld [vmem:[#allocation9 + $0xb0] sm:$0xff]  ;;  %v436_v39 = vld [vmem:[#allocation9 + $0xa8] sm:$0xff] }
  0x4f   :  { %314 = vmatpush.msrb.mxu0 %v108_v50  ;;  %334 = vmatpush.msrb.mxu1 %v172_v51  ;;  %v438_v32 = vld [vmem:[#allocation9 + $0xb8] sm:$0xff]  ;;  %v473_v37 = vld [vmem:[#allocation9 + $0x1d0] sm:$0xff]  ;;  %v472_v41 = vld [vmem:[#allocation9 + $0x1c8] sm:$0xff] }
  0x50   :  { %354 = vmatpush.msrb.mxu2 %v109_v52  ;;  %374 = vmatpush.msrb.mxu3 %v173_v53  ;;  %v454_v36 = vld [vmem:[#allocation9 + $0x138] sm:$0xff]  ;;  %v453_v40 = vld [vmem:[#allocation9 + $0x130] sm:$0xff]  ;;  %v435_v43 = vld [vmem:[#allocation9 + $0xa0] sm:$0xff] }
  0x51   :  { %315 = vmatpush.msrb.mxu0 %v104_v54  ;;  %335 = vmatpush.msrb.mxu1 %v168_v55  ;;  %v418_v42 = vld [vmem:[#allocation9 + $0x18] sm:$0xff]  ;;  %v452_v44 = vld [vmem:[#allocation9 + $0x128] sm:$0xff]  ;;  %v471_v45 = vld [vmem:[#allocation9 + $0x1c0] sm:$0xff] }
  0x52   :  { %355 = vmatpush.msrb.mxu2 %v105_v56  ;;  %375 = vmatpush.msrb.mxu3 %v169_v57  ;;  %v417_v46 = vld [vmem:[#allocation9 + $0x10] sm:$0xff]  ;;  %v434_v47 = vld [vmem:[#allocation9 + $0x98] sm:$0xff]  ;;  %v416_v50 = vld [vmem:[#allocation9 + $0x8] sm:$0xff] }
  0x53   :  { %316 = vmatpush.msrb.mxu0 %v100_v58  ;;  %336 = vmatpush.msrb.mxu1 %v164_v59  ;;  %v433_v51 = vld [vmem:[#allocation9 + $0x90] sm:$0xff]  ;;  %v450_v52 = vld [vmem:[#allocation9 + $0x118] sm:$0xff]  ;;  %v415_v54 = vld [vmem:[#allocation9] sm:$0xff] }
  0x54   :  { %356 = vmatpush.msrb.mxu2 %v101_v60  ;;  %376 = vmatpush.msrb.mxu3 %v165_v61  ;;  %v469_v53 = vld [vmem:[#allocation9 + $0x1b0] sm:$0xff]  ;;  %v432_v55 = vld [vmem:[#allocation9 + $0x88] sm:$0xff]  ;;  %v431_v58 = vld [vmem:[#allocation9 + $0x80] sm:$0xff] }
  0x55   :  { %317 = vmatpush.msrb.mxu0 %v96_v62  ;;  %337 = vmatpush.msrb.mxu1 %v160_v63  ;;  %v449_v56 = vld [vmem:[#allocation9 + $0x110] sm:$0xff]  ;;  %v468_v57 = vld [vmem:[#allocation9 + $0x1a8] sm:$0xff]  ;;  %v467_v60 = vld [vmem:[#allocation9 + $0x1a0] sm:$0xff] }
  0x56   :  { %357 = vmatpush.msrb.mxu2 %v97_v0  ;;  %377 = vmatpush.msrb.mxu3 %v161_v1  ;;  %v448_v59 = vld [vmem:[#allocation9 + $0x108] sm:$0xff]  ;;  %v447_v61 = vld [vmem:[#allocation9 + $0x100] sm:$0xff]  ;;  %v466_v62 = vld [vmem:[#allocation9 + $0x198] sm:$0xff] }
  0x57   :  { %318 = vmatmul.f32.vlgmr.msrb.gmra.mxu0 %v92_v48  ;;  %338 = vmatmul.f32.vlgmr.msrb.gmra.mxu1 %v93_v49  ;;  %v465_v63 = vld [vmem:[#allocation9 + $0x190] sm:$0xff]  ;;  %v464_v0 = vld [vmem:[#allocation9 + $0x188] sm:$0xff]  ;;  %v463_v1 = vld [vmem:[#allocation9 + $0x180] sm:$0xff] }
  0x58   :  { %358 = vmatmul.f32.vlgmr.msrb.gmra.mxu2 %v92_v48  ;;  %378 = vmatmul.f32.vlgmr.msrb.gmra.mxu3 %v93_v49  ;;  %v451_v48 = vld [vmem:[#allocation9 + $0x120] sm:$0xff]  ;;  %v470_v49 = vld [vmem:[#allocation9 + $0x1b8] sm:$0xff] }
  0x59   :  { %483 = vmatpush.msra.mxu0 %v430_v2  ;;  %503 = vmatpush.msra.mxu1 %v446_v3  ;;  %v397_v2 = vld [vmem:[#allocation8] sm:$0xf] }
  0x5a   :  { %523 = vmatpush.msra.mxu2 %v462_v4  ;;  %543 = vmatpush.msra.mxu3 %v478_v5  ;;  %v399_v3 = vperm.slane %v397_v2, 0 }
  0x5b   :  { %484 = vmatpush.msra.mxu0 %v429_v6  ;;  %504 = vmatpush.msra.mxu1 %v445_v7 }
  0x5c   :  { %524 = vmatpush.msra.mxu2 %v461_v8  ;;  %544 = vmatpush.msra.mxu3 %v477_v9  ;;  %v400_v9 = vperm.slane %v397_v2, 1 }
  0x5d   :  { %485 = vmatpush.msra.mxu0 %v428_v10  ;;  %505 = vmatpush.msra.mxu1 %v444_v11 }
  0x5e   :  { %525 = vmatpush.msra.mxu2 %v460_v12  ;;  %545 = vmatpush.msra.mxu3 %v476_v13  ;;  %v401_v13 = vperm.slane %v397_v2, 2 }
  0x5f   :  { %486 = vmatpush.msra.mxu0 %v427_v14  ;;  %506 = vmatpush.msra.mxu1 %v443_v15 }
  0x60   :  { %526 = vmatpush.msra.mxu2 %v459_v16  ;;  %546 = vmatpush.msra.mxu3 %v475_v17 }
  0x61   :  { %487 = vmatpush.msra.mxu0 %v426_v18  ;;  %507 = vmatpush.msra.mxu1 %v442_v19 }
  0x62   :  { %527 = vmatpush.msra.mxu2 %v458_v20  ;;  %547 = vmatpush.msra.mxu3 %v474_v21  ;;  %v402_v21 = vperm.slane %v397_v2, 3 }
  0x63   :  { %488 = vmatpush.msra.mxu0 %v425_v22  ;;  %508 = vmatpush.msra.mxu1 %v441_v23 }
  0x64   :  { %528 = vmatpush.msra.mxu2 %v457_v24  ;;  %548 = vmatpush.msra.mxu3 %v473_v37 }
  0x65   :  { %489 = vmatpush.msra.mxu0 %v424_v25  ;;  %509 = vmatpush.msra.mxu1 %v440_v26 }
  0x66   :  { %529 = vmatpush.msra.mxu2 %v456_v27  ;;  %549 = vmatpush.msra.mxu3 %v472_v41  ;;  %v592_v27 = vld [vmem:[%s782_s4] ss:$0 sm:$0xff] }
  0x67   :  { %490 = vmatpush.msra.mxu0 %v423_v28  ;;  %510 = vmatpush.msra.mxu1 %v439_v29 }
  0x68   :  { %530 = vmatpush.msra.mxu2 %v455_v30  ;;  %550 = vmatpush.msra.mxu3 %v471_v45 }
  0x69   :  { %491 = vmatpush.msra.mxu0 %v422_v31  ;;  %511 = vmatpush.msra.mxu1 %v438_v32 }
  0x6a   :  { %531 = vmatpush.msra.mxu2 %v454_v36  ;;  %551 = vmatpush.msra.mxu3 %v470_v49 }
  0x6b   :  { %492 = vmatpush.msra.mxu0 %v421_v33  ;;  %512 = vmatpush.msra.mxu1 %v437_v35 }
  0x6c   :  { %532 = vmatpush.msra.mxu2 %v453_v40  ;;  %552 = vmatpush.msra.mxu3 %v469_v53 }
  0x6d   :  { %493 = vmatpush.msra.mxu0 %v420_v34  ;;  %513 = vmatpush.msra.mxu1 %v436_v39 }
  0x6e   :  { %533 = vmatpush.msra.mxu2 %v452_v44  ;;  %553 = vmatpush.msra.mxu3 %v468_v57 }
  0x6f   :  { %494 = vmatpush.msra.mxu0 %v419_v38  ;;  %514 = vmatpush.msra.mxu1 %v435_v43 }
  0x70   :  { %534 = vmatpush.msra.mxu2 %v451_v48  ;;  %554 = vmatpush.msra.mxu3 %v467_v60 }
  0x71   :  { %495 = vmatpush.msra.mxu0 %v418_v42  ;;  %515 = vmatpush.msra.mxu1 %v434_v47 }
  0x72   :  { %535 = vmatpush.msra.mxu2 %v450_v52  ;;  %555 = vmatpush.msra.mxu3 %v466_v62 }
  0x73   :  { %496 = vmatpush.msra.mxu0 %v417_v46  ;;  %516 = vmatpush.msra.mxu1 %v433_v51 }
  0x74   :  { %536 = vmatpush.msra.mxu2 %v449_v56  ;;  %556 = vmatpush.msra.mxu3 %v465_v63 }
  0x75   :  { %497 = vmatpush.msra.mxu0 %v416_v50  ;;  %517 = vmatpush.msra.mxu1 %v432_v55 }
  0x76   :  { %537 = vmatpush.msra.mxu2 %v448_v59  ;;  %557 = vmatpush.msra.mxu3 %v464_v0 }
  0x77   :  { %498 = vmatpush.msra.mxu0 %v415_v54  ;;  %518 = vmatpush.msra.mxu1 %v431_v58 }
  0x78   :  { %538 = vmatpush.msra.mxu2 %v447_v61  ;;  %558 = vmatpush.msra.mxu3 %v463_v1 }
  0xca   :  { %v239_v4 = vpop.f32.mrf.mxu0  ;;  %v259_v5 = vpop.f32.mrf.mxu1 }
  0xcb   :  { %v260_v6 = vadd.f32 %v259_v5, %v239_v4 }
  0xcd   :  { %v407_v7 = vadd.f32 %v399_v3, %v260_v6 }
  0xcf   :  { %v411_v8 = vmax.f32 %v407_v7, 0.0 }
  0xd1   :  { %v279_v10 = vpop.f32.mrf.mxu2  ;;  %v299_v11 = vpop.f32.mrf.mxu3  ;;  %499 = vmatmul.f32.vlgmr.msra.gmra.mxu0 %v411_v8 }
  0xd2   :  { %v300_v12 = vadd.f32 %v299_v11, %v279_v10 }
  0xd4   :  { %v408_v14 = vadd.f32 %v400_v9, %v300_v12  ;;  %v319_v15 = vpop.f32.mrf.mxu0  ;;  %v339_v16 = vpop.f32.mrf.mxu1 }
  0xd5   :  { %v340_v17 = vadd.f32 %v339_v16, %v319_v15 }
  0xd6   :  { %v412_v18 = vmax.f32 %v408_v14, 0.0 }
  0xd7   :  { %v409_v19 = vadd.f32 %v401_v13, %v340_v17 }
  0xd8   :  { %519 = vmatmul.f32.vlgmr.msra.gmra.mxu1 %v412_v18 }
  0xd9   :  { %v413_v20 = vmax.f32 %v409_v19, 0.0 }
  0xdb   :  { %v359_v22 = vpop.f32.mrf.mxu2  ;;  %v379_v23 = vpop.f32.mrf.mxu3  ;;  %539 = vmatmul.f32.vlgmr.msra.gmra.mxu2 %v413_v20 }
  0xdc   :  { %v380_v24 = vadd.f32 %v379_v23, %v359_v22 }
  0xde   :  { %v410_v25 = vadd.f32 %v402_v21, %v380_v24 }
  0xe0   :  { %v414_v26 = vmax.f32 %v410_v25, 0.0 }
  0xe2   :  { %559 = vmatmul.f32.vlgmr.msra.gmra.mxu3 %v414_v26 }
 0x14e   :  { %v500_v28 = vpop.f32.mrf.mxu0 }
 0x14f   :  { %v501_v29 = vadd.f32 %v592_v27, %v500_v28 }
 0x155   :  { %v520_v30 = vpop.f32.mrf.mxu1 }
 0x156   :  { %v521_v32 = vadd.f32 %v520_v30, %v501_v29 }
 0x15e   :  { %v540_v31 = vpop.f32.mrf.mxu2 }
 0x15f   :  { %v541_v33 = vadd.f32 %v540_v31, %v521_v32 }
 0x165   :  { %v560_v34 = vpop.f32.mrf.mxu3 }
 0x166   :  { %v561_v35 = vadd.f32 %v560_v34, %v541_v33 }
 0x168   :  { %563 = vst [vmem:[#allocation11] sm:$0xff] %v561_v35 }
 0x169   :  { %574 = dma.vmem_to_hbm [thread:$0]  %s570_s16, 128, %s572_s19, [#allocation5]  }
 0x16a   :  { %719 = dma.done.wait [#allocation5], 128  }
 0x16b   :  { %720 = vsyncadd [#allocation5], 4294967168 }
 0x16c   :  { %579 = vsyncpa [#allocation4], 1 }
 0x16d   :  { %580 = vsyncpa [#allocation7], 1 }
 0x16e   :  { %581 = vsyncpa [#allocation10], 1 }
 0x16f   :  { %582 = vsyncpa [#allocation5], 1 }

</bundles_post_ra>
